<compile_context>
chip_gen: v5e
topology: v5e:2x2
jax: 0.10.0
libtpu: 0.0.40
codegen_flags: <defaults>
</compile_context>

<pallas_src>
import functools

import jax
import jax.numpy as jnp
from jax.experimental import pallas as pl
from jax.experimental.pallas import tpu as pltpu

LOG_SIG_MAX = 2.0
LOG_SIG_MIN = -20.0
HIDDEN = 256
LANE = 128


def _round_up(x, m):
    return ((x + m - 1) // m) * m


def rho_actor_kernel(x_ref, w1_ref, b1_ref, wh_ref, bh_ref, out_ref, *, out_dim):
    # hidden layer: Linear + ReLU (bf16 MXU matmul, f32 accumulation; bias/ReLU f32)
    h = jnp.dot(x_ref[...], w1_ref[...], preferred_element_type=jnp.float32)
    h = jnp.maximum(h + b1_ref[...], 0.0)

    # fused [mean | log_std | zero-pad] heads: one lane-dense matmul, one
    # full-width (unmasked) store.
    y = jnp.dot(h.astype(wh_ref.dtype), wh_ref[...],
                preferred_element_type=jnp.float32) + bh_ref[...]

    # Clamp only lanes >= out_dim.  Note this clamps the zero-pad lanes
    # (lane >= 2*out_dim) as well: they hold exact zeros, so clamp is a no-op
    # there and those lanes are discarded by the wrapper.  Do NOT "fix" this.
    lane = jax.lax.broadcasted_iota(jnp.int32, y.shape, 1)
    y_clamped = jnp.clip(y, LOG_SIG_MIN, LOG_SIG_MAX)
    out_ref[...] = jnp.where(lane >= out_dim, y_clamped, y).astype(out_ref.dtype)


def pack_params(w1, b1, wm, bm, ws, bs):
    """One-time parameter packing + casts. Call at init time, NOT per forward."""
    inp, H = w1.shape
    out = wm.shape[1]
    out_lanes = _round_up(2 * out, LANE)          # lane-dense output slab width

    # W_heads = [Wm | Ws | 0], b_heads = [bm | bs | 0]
    w_heads = jnp.zeros((H, out_lanes), jnp.float32)
    w_heads = w_heads.at[:, :out].set(wm).at[:, out:2 * out].set(ws)
    b_heads = jnp.zeros((1, out_lanes), jnp.float32)
    b_heads = b_heads.at[:, :out].set(bm.reshape(1, out))
    b_heads = b_heads.at[:, out:2 * out].set(bs.reshape(1, out))

    return {
        "w1": w1.astype(jnp.bfloat16),            # bf16 into the MXU
        "b1": b1.reshape(1, H).astype(jnp.float32),
        "w_heads": w_heads.astype(jnp.bfloat16),
        "b_heads": b_heads,                       # f32 bias
        "out_dim": out,                           # static python int
    }


def rho_actor_forward(x, params, *, block_b=1024):
    w1, b1 = params["w1"], params["b1"]
    wh, bh = params["w_heads"], params["b_heads"]
    out_dim = params["out_dim"]

    B, inp = x.shape
    H = w1.shape[1]
    out_lanes = wh.shape[1]

    x_bf = x.astype(jnp.bfloat16)

    # --- batch tiling: pad to a multiple of the tile (no OOB edge block) -----
    b_pad = _round_up(B, 8)
    tb = min(block_b, b_pad)                      # multiple of 8 by construction
    if b_pad // tb < 2 and b_pad >= 16:
        # ensure >= 2 grid steps so v7x's second TensorCore gets work
        tb = _round_up(pl.cdiv(b_pad, 2), 8)
    b_total = _round_up(b_pad, tb)
    if b_total != B:
        x_bf = jnp.pad(x_bf, ((0, b_total - B), (0, 0)))
    grid = (b_total // tb,)

    flops = 2 * b_total * (inp * H + H * out_lanes)
    bytes_accessed = (x_bf.size * 2 + w1.size * 2 + b1.size * 4
                      + wh.size * 2 + bh.size * 4 + b_total * out_lanes * 4)

    kernel = functools.partial(rho_actor_kernel, out_dim=out_dim)
    y = pl.pallas_call(
        kernel,
        out_shape=jax.ShapeDtypeStruct((b_total, out_lanes), jnp.float32),
        grid_spec=pltpu.PrefetchScalarGridSpec(
            num_scalar_prefetch=0,
            grid=grid,
            in_specs=[
                pl.BlockSpec((tb, inp), lambda i: (i, 0)),        # x: batch-tiled
                pl.BlockSpec((inp, H), lambda i: (0, 0)),         # W1: VMEM-resident
                pl.BlockSpec((1, H), lambda i: (0, 0)),           # b1: resident
                pl.BlockSpec((H, out_lanes), lambda i: (0, 0)),   # fused W heads
                pl.BlockSpec((1, out_lanes), lambda i: (0, 0)),   # fused b heads
            ],
            out_specs=pl.BlockSpec((tb, out_lanes), lambda i: (i, 0)),
        ),
        compiler_params=pltpu.CompilerParams(
            dimension_semantics=("parallel",)),
        cost_estimate=pl.CostEstimate(
            flops=flops, transcendentals=0, bytes_accessed=bytes_accessed),
    )(x_bf, w1, b1, wh, bh)

    # TODO(synk): for the best end-to-end HBM traffic, fuse the consumer
    # (tanh-squash / sampling of .sample()) into this kernel instead of
    # re-reading the slab here with two slice ops.
    mean = y[:B, :out_dim]
    log_std = y[:B, out_dim:2 * out_dim]
    return mean, log_std


# ------------------------- init / reference -----------------------------------
def xavier_uniform(key, fan_in, fan_out, dtype=jnp.float32):
    bound = jnp.sqrt(6.0 / (fan_in + fan_out))
    return jax.random.uniform(key, (fan_in, fan_out), dtype=dtype,
                              minval=-bound, maxval=bound)


def init_params(key, inp, out):
    k1, k2, k3 = jax.random.split(key, 3)
    w1 = xavier_uniform(k1, inp, HIDDEN)
    b1 = jnp.zeros((HIDDEN,), jnp.float32)
    wm = xavier_uniform(k2, HIDDEN, out)
    bm = jnp.zeros((out,), jnp.float32)
    ws = xavier_uniform(k3, HIDDEN, out)
    bs = jnp.zeros((out,), jnp.float32)
    return w1, b1, wm, bm, ws, bs


def reference_forward(x, w1, b1, wm, bm, ws, bs):
    # Same dtype policy as the kernel (bf16 MXU inputs, f32 accumulation),
    # matching the clamp / ReLU semantics of the PyTorch module.
    bf = jnp.bfloat16
    h = jnp.dot(x.astype(bf), w1.astype(bf),
                preferred_element_type=jnp.float32) + b1.reshape(1, -1)
    h = jnp.maximum(h, 0.0)
    mean = jnp.dot(h.astype(bf), wm.astype(bf),
                   preferred_element_type=jnp.float32) + bm.reshape(1, -1)
    log_std = jnp.dot(h.astype(bf), ws.astype(bf),
                      preferred_element_type=jnp.float32) + bs.reshape(1, -1)
    return mean, jnp.clip(log_std, LOG_SIG_MIN, LOG_SIG_MAX)


if __name__ == "__main__":
    key = jax.random.PRNGKey(0)
    k_x, k_p = jax.random.split(key)

    B, INP, OUT = 8, 32, 8           # small shapes consistent with the module
    x = jax.random.normal(k_x, (B, INP), jnp.float32)
    raw_params = init_params(k_p, INP, OUT)

    packed = pack_params(*raw_params)            # one-time packing / casting
    fwd = jax.jit(lambda xx: rho_actor_forward(xx, packed))

    mean, log_std = jax.block_until_ready(fwd(x))

    mean_ref, log_std_ref = reference_forward(x, *raw_params)
    assert mean.shape == (B, OUT) and log_std.shape == (B, OUT)
    assert jnp.allclose(mean, mean_ref, atol=2e-3, rtol=2e-3), "mean mismatch"
    assert jnp.allclose(log_std, log_std_ref, atol=2e-3, rtol=2e-3), "log_std mismatch"
    assert float(log_std.max()) <= LOG_SIG_MAX and float(log_std.min()) >= LOG_SIG_MIN

    print("KERNEL_OK")
</pallas_src>

<mosaic_0001>
module attributes {stable_mosaic.version = 11 : i64} {
  func.func @rho_actor_kernel(%arg0: i32, %arg1: memref<8x32xbf16, #tpu.memory_space<vmem>>, %arg2: memref<32x256xbf16, #tpu.memory_space<vmem>>, %arg3: memref<1x256xf32, #tpu.memory_space<vmem>>, %arg4: memref<256x128xbf16, #tpu.memory_space<vmem>>, %arg5: memref<1x128xf32, #tpu.memory_space<vmem>>, %arg6: memref<8x128xf32, #tpu.memory_space<vmem>>) attributes {dimension_semantics = [#tpu.dimension_semantics<parallel>], iteration_bounds = array<i64: 1>, scalar_prefetch = 0 : i64, scratch_operands = 0 : i64, tpu.core_type = #tpu.core_type<tc>, window_params = [{transform_indices = @transform_0, window_bounds = array<i64: 8, 32>}, {pipeline_mode = #tpu.pipeline_mode<synchronous>, transform_indices = @transform_1, window_bounds = array<i64: 32, 256>}, {pipeline_mode = #tpu.pipeline_mode<synchronous>, transform_indices = @transform_2, window_bounds = array<i64: 1, 256>}, {pipeline_mode = #tpu.pipeline_mode<synchronous>, transform_indices = @transform_3, window_bounds = array<i64: 256, 128>}, {pipeline_mode = #tpu.pipeline_mode<synchronous>, transform_indices = @transform_4, window_bounds = array<i64: 1, 128>}, {transform_indices = @transform_5, window_bounds = array<i64: 8, 128>}]} {
    %c0 = arith.constant 0 : index
    %c0_0 = arith.constant 0 : index
    %0 = vector.load %arg1[%c0, %c0_0] : memref<8x32xbf16, #tpu.memory_space<vmem>>, vector<8x32xbf16>
    %c0_1 = arith.constant 0 : index
    %c0_2 = arith.constant 0 : index
    %1 = vector.load %arg2[%c0_1, %c0_2] : memref<32x256xbf16, #tpu.memory_space<vmem>>, vector<32x256xbf16>
    %cst = arith.constant dense<0.000000e+00> : vector<8x256xf32>
    %2 = tpu.matmul %0, %1, %cst {dimension_numbers = #tpu.dot_dimension_numbers<[1], [0], [0], [1], [0, 0, 1, 1], [], []>} : vector<8x32xbf16>, vector<32x256xbf16>, vector<8x256xf32> -> vector<8x256xf32>
    %c0_3 = arith.constant 0 : index
    %c0_4 = arith.constant 0 : index
    %3 = vector.load %arg3[%c0_3, %c0_4] : memref<1x256xf32, #tpu.memory_space<vmem>>, vector<1x256xf32>
    %4 = vector.broadcast %3 : vector<1x256xf32> to vector<8x256xf32>
    %5 = arith.addf %2, %4 : vector<8x256xf32>
    %cst_5 = arith.constant 0.000000e+00 : f32
    %6 = vector.broadcast %cst_5 : f32 to vector<8x256xf32>
    %7 = arith.maximumf %5, %6 : vector<8x256xf32>
    %8 = arith.truncf %7 : vector<8x256xf32> to vector<8x256xbf16>
    %c0_6 = arith.constant 0 : index
    %c0_7 = arith.constant 0 : index
    %9 = vector.load %arg4[%c0_6, %c0_7] : memref<256x128xbf16, #tpu.memory_space<vmem>>, vector<256x128xbf16>
    %cst_8 = arith.constant dense<0.000000e+00> : vector<8x128xf32>
    %10 = tpu.matmul %8, %9, %cst_8 {dimension_numbers = #tpu.dot_dimension_numbers<[1], [0], [0], [1], [0, 0, 1, 1], [], []>} : vector<8x256xbf16>, vector<256x128xbf16>, vector<8x128xf32> -> vector<8x128xf32>
    %c0_9 = arith.constant 0 : index
    %c0_10 = arith.constant 0 : index
    %11 = vector.load %arg5[%c0_9, %c0_10] : memref<1x128xf32, #tpu.memory_space<vmem>>, vector<1x128xf32>
    %12 = vector.broadcast %11 : vector<1x128xf32> to vector<8x128xf32>
    %13 = arith.addf %10, %12 : vector<8x128xf32>
    %14 = tpu.iota {dimensions = array<i32: 1>} : vector<8x128xi32>
    %cst_11 = arith.constant -2.000000e+01 : f32
    %cst_12 = arith.constant 2.000000e+00 : f32
    %15 = vector.broadcast %cst_11 : f32 to vector<8x128xf32>
    %16 = arith.maximumf %15, %13 : vector<8x128xf32>
    %17 = vector.broadcast %cst_12 : f32 to vector<8x128xf32>
    %18 = arith.minimumf %17, %16 : vector<8x128xf32>
    %c8_i32 = arith.constant 8 : i32
    %19 = vector.broadcast %c8_i32 : i32 to vector<8x128xi32>
    %20 = arith.cmpi sge, %14, %19 : vector<8x128xi32>
    %21 = arith.select %20, %18, %13 : vector<8x128xi1>, vector<8x128xf32>
    %c0_13 = arith.constant 0 : index
    %c0_14 = arith.constant 0 : index
    %22 = vector.load %arg6[%c0_13, %c0_14] : memref<8x128xf32, #tpu.memory_space<vmem>>, vector<8x128xf32>
    tpu.vector_store %arg6[%c0_13, %c0_14], %21 {strides = array<i32>} : memref<8x128xf32, #tpu.memory_space<vmem>>, vector<8x128xf32>,
    return
  }
  func.func @transform_0(%arg0: i32) -> (i32, i32) {
    %c0_i32 = arith.constant 0 : i32
    %c0_i32_0 = arith.constant 0 : i32
    return %arg0, %c0_i32 : i32, i32
  }
  func.func @transform_1(%arg0: i32) -> (i32, i32) {
    %c0_i32 = arith.constant 0 : i32
    %c0_i32_0 = arith.constant 0 : i32
    %c0_i32_1 = arith.constant 0 : i32
    return %c0_i32, %c0_i32_0 : i32, i32
  }
  func.func @transform_2(%arg0: i32) -> (i32, i32) {
    %c0_i32 = arith.constant 0 : i32
    %c0_i32_0 = arith.constant 0 : i32
    %c0_i32_1 = arith.constant 0 : i32
    return %c0_i32, %c0_i32_0 : i32, i32
  }
  func.func @transform_3(%arg0: i32) -> (i32, i32) {
    %c0_i32 = arith.constant 0 : i32
    %c0_i32_0 = arith.constant 0 : i32
    %c0_i32_1 = arith.constant 0 : i32
    return %c0_i32, %c0_i32_0 : i32, i32
  }
  func.func @transform_4(%arg0: i32) -> (i32, i32) {
    %c0_i32 = arith.constant 0 : i32
    %c0_i32_0 = arith.constant 0 : i32
    %c0_i32_1 = arith.constant 0 : i32
    return %c0_i32, %c0_i32_0 : i32, i32
  }
  func.func @transform_5(%arg0: i32) -> (i32, i32) {
    %c0_i32 = arith.constant 0 : i32
    %c0_i32_0 = arith.constant 0 : i32
    return %arg0, %c0_i32 : i32, i32
  }
}

</mosaic_0001>

<bundles_post_ra>
// kernel: _lambda_.1
= control target key start
LH: loop header
LB: loop body
LE: loop exit
PB: predicated region body
PF: predicated region fallthrough
CT: control target
= control target key end

     0   :  { %10 = vsyncpa [#allocation3], 0  ;;  %s504_s0 = inlined_call_operand.vmem [shape: bf16[8,32], index: 0, kind: input, shape index: {}]   ;;  %s505_s1 = inlined_call_operand.hbm [shape: bf16[32,256], index: 1, kind: input, shape index: {}]   ;;  %s506_s2 = inlined_call_operand.vmem [shape: f32[1,256], index: 2, kind: input, shape index: {}]   ;;  %s507_s3 = inlined_call_operand.hbm [shape: bf16[256,128], index: 3, kind: input, shape index: {}]   ;;  %s508_s4 = inlined_call_operand.vmem [shape: f32[1,128], index: 4, kind: input, shape index: {}]   ;;  %s509_s5 = inlined_call_operand.vmem [shape: f32[8,128], index: 5, kind: output, shape index: {}]  }
   0x1   :  { %s18_s20 = sshll.u32 %s505_s1, 4  ;;  %s19_s20 = int_to_ptr.hbm [resolvable:$true] %s18_s20 }
   0x2   :  { %11 = vsyncpa [#allocation5], 0  ;;  %s450_s21 = smov [#allocation2]   ;;  %s33_s25 = sshll.u32 %s507_s3, 4  ;;  %s34_s25 = int_to_ptr.hbm [resolvable:$true] %s33_s25 }
   0x3   :  { %s20_s22 = sshll.u32 %s450_s21, 4  ;;  %s451_s26 = smov 128   ;;  %s21_s22 = int_to_ptr.vmem [resolvable:$true] %s20_s22 }
   0x4   :  { %s452_s27 = smov 8   ;;  %s453_s28 = smov [#allocation4]  }
   0x5   :  { %26 = dma.hbm_to_vmem [thread:$0]  %s19_s20, 512, %s21_s22, [#allocation3], %s451_s26, %s451_s26, %s452_s27  }
   0x6   :  { %s35_s29 = sshll.u32 %s453_s28, 4  ;;  %s454_s30 = smov 64   ;;  %s36_s29 = int_to_ptr.vmem [resolvable:$true] %s35_s29 }
   0x7   :  { %s455_s6 = smov 4  }
   0x8   :  { %41 = dma.hbm_to_vmem [thread:$0]  %s34_s25, 2048, %s36_s29, [#allocation5], %s454_s30, %s454_s30, %s455_s6  }
   0x9   :  { %446 = dma.done.wait [#allocation3], 512  }
   0xa   :  { %447 = vsyncadd [#allocation3], 4294966784 }
   0xb   :  { %448 = dma.done.wait [#allocation5], 2048  }
   0xc   :  { %449 = vsyncadd [#allocation5], 4294965248  ;;  %v299_v0 = vld [vmem:[#allocation2 + $0x10] sm:$0xf]  ;;  %v374_v1 = vld [vmem:[#allocation2 + $0x14] sm:$0xf0]  ;;  %v276_v43 = vlaneseq }
   0xd   :  { %v373_v2 = vld [vmem:[#allocation2 + $0x14] sm:$0xf]  ;;  %v300_v3 = vor.u32 %v374_v1, %v299_v0  ;;  %v301_v4 = vld [vmem:[#allocation2 + $0x18] sm:$0xf0]  ;;  %v291_v5 = vld [vmem:[#allocation2] sm:$0xf] }
   0xe   :  { %v372_v6 = vld [vmem:[#allocation2 + $0x4] sm:$0xf0]  ;;  %v304_v7 = vor.u32 %v373_v2, %v301_v4  ;;  %v371_v8 = vld [vmem:[#allocation2 + $0x4] sm:$0xf]  ;;  %v293_v9 = vld [vmem:[#allocation2 + $0x8] sm:$0xf0] }
   0xf   :  { %94 = vmatpush.bf16.msra.mxu0 %v300_v3  ;;  %v292_v10 = vor.u32 %v372_v6, %v291_v5  ;;  %v382_v11 = vld [vmem:[#allocation4 + $0x38] sm:$0xff]  ;;  %v296_v13 = vor.u32 %v371_v8, %v293_v9  ;;  %v381_v14 = vld [vmem:[#allocation4 + $0x30] sm:$0xff]  ;;  %v53_v16 = vld [vmem:[%s504_s0] sm:$0xf]  ;;  %vm84_vm0 = vcmask 261120   ;;  %v277_v47 = vand.u32 127, %v276_v43 }
  0x10   :  { %v390_v12 = vld [vmem:[#allocation4 + $0x78] sm:$0xff]  ;;  %107 = vmatpush.bf16.msra.mxu1 %v304_v7  ;;  %250 = vmatpush.bf16.msra.mxu2 %v382_v11  ;;  %v389_v15 = vld [vmem:[#allocation4 + $0x70] sm:$0xff]  ;;  %v380_v17 = vld [vmem:[#allocation4 + $0x28] sm:$0xff] }
  0x11   :  { %263 = vmatpush.bf16.msra.mxu3 %v390_v12  ;;  %v388_v18 = vld [vmem:[#allocation4 + $0x68] sm:$0xff]  ;;  %v379_v19 = vld [vmem:[#allocation4 + $0x20] sm:$0xff]  ;;  %v378_v21 = vld [vmem:[#allocation4 + $0x18] sm:$0xff]  ;;  %vm280_vm1 = vcmp.ge.s32.totalorder %v277_v47, 8 }
  0x12   :  { %v387_v20 = vld [vmem:[#allocation4 + $0x60] sm:$0xff]  ;;  %v386_v22 = vld [vmem:[#allocation4 + $0x58] sm:$0xff]  ;;  %v377_v23 = vld [vmem:[#allocation4 + $0x10] sm:$0xff] }
  0x13   :  { %95 = vmatpush.bf16.msra.mxu0 %v292_v10  ;;  %v385_v24 = vld [vmem:[#allocation4 + $0x50] sm:$0xff]  ;;  %v376_v25 = vld [vmem:[#allocation4 + $0x8] sm:$0xff]  ;;  %v375_v27 = vld [vmem:[#allocation4] sm:$0xff] }
  0x14   :  { %108 = vmatpush.bf16.msra.mxu1 %v296_v13  ;;  %251 = vmatpush.bf16.msra.mxu2 %v381_v14  ;;  %v384_v26 = vld [vmem:[#allocation4 + $0x48] sm:$0xff]  ;;  %v383_v28 = vld [vmem:[#allocation4 + $0x40] sm:$0xff] }
  0x15   :  { %264 = vmatpush.bf16.msra.mxu3 %v389_v15  ;;  %v58_v29 = vld [vmem:[%s506_s2] sm:$0x3] }
  0x16   :  { %305 = vmatmul.msk.bf16.vlgmr.msra.gmra.mxu0 %vm84_vm0, %v53_v16  ;;  %v60_v30 = vperm.slane %v58_v29, 0  ;;  %v61_v31 = vperm.slane %v58_v29, 1  ;;  %v397_v42 = vld [vmem:[%s508_s4] ss:$0 sm:$0xff] }
  0x17   :  { %306 = vmatmul.msk.bf16.vlgmr.msra.gmra.mxu1 %vm84_vm0, %v53_v16 }
  0x18   :  { %252 = vmatpush.bf16.msra.mxu2 %v380_v17 }
  0x19   :  { %265 = vmatpush.bf16.msra.mxu3 %v388_v18 }
  0x1c   :  { %253 = vmatpush.bf16.msra.mxu2 %v379_v19 }
  0x1d   :  { %266 = vmatpush.bf16.msra.mxu3 %v387_v20 }
  0x20   :  { %254 = vmatpush.bf16.msra.mxu2 %v378_v21 }
  0x21   :  { %267 = vmatpush.bf16.msra.mxu3 %v386_v22 }
  0x24   :  { %255 = vmatpush.bf16.msra.mxu2 %v377_v23 }
  0x25   :  { %268 = vmatpush.bf16.msra.mxu3 %v385_v24 }
  0x28   :  { %256 = vmatpush.bf16.msra.mxu2 %v376_v25 }
  0x29   :  { %269 = vmatpush.bf16.msra.mxu3 %v384_v26 }
  0x2c   :  { %257 = vmatpush.bf16.msra.mxu2 %v375_v27 }
  0x2d   :  { %270 = vmatpush.bf16.msra.mxu3 %v383_v28 }
  0x93   :  { %v97_v32 = vpop.f32.mrf.mxu0 }
  0x94   :  { %v98_v33 = vadd.f32 %v97_v32, %v60_v30  ;;  %v110_v34 = vpop.f32.mrf.mxu1 }
  0x95   :  { %v111_v35 = vadd.f32 %v110_v34, %v61_v31 }
  0x96   :  { %v114_v36 = vmax.f32 %v98_v33, 0.0 }
  0x97   :  { %v115_v37 = vmax.f32 %v111_v35, 0.0 }
  0x98   :  { %v116_v38 = vpack.c.bf16 %v114_v36, %v114_v36 }
  0x99   :  { %v117_v39 = vpack.c.bf16 %v115_v37, %v115_v37 }
  0x9a   :  { %258 = vmatmul.bf16.vlgmr.msra.gmra.mxu2 %v116_v38 }
  0x9b   :  { %271 = vmatmul.bf16.vlgmr.msra.gmra.mxu3 %v117_v39  ;;  %v99_v40 = vpop.f32.mrf.mxu0 }
  0x9c   :  { %v112_v41 = vpop.f32.mrf.mxu1 }
 0x11d   :  { %v259_v44 = vpop.f32.mrf.mxu2 }
 0x11e   :  { %v260_v45 = vadd.f32 %v397_v42, %v259_v44  ;;  %v272_v46 = vpop.f32.mrf.mxu3 }
 0x120   :  { %v273_v48 = vadd.f32 %v272_v46, %v260_v45 }
 0x122   :  { %v278_v49 = vmax.f32 %v273_v48, -20.0 }
 0x124   :  { %v279_v50 = vmin.f32 %v278_v49, 2.0 }
 0x125   :  { %v261_v51 = vpop.f32.mrf.mxu2 }
 0x126   :  { %v281_v52 = vsel %vm280_vm1, %v279_v50, %v273_v48  ;;  %v274_v53 = vpop.f32.mrf.mxu3 }
 0x127   :  { %282 = vst [vmem:[%s509_s5] sm:$0xff] %v281_v52 }
 0x128   :  { %287 = vsyncpa [#allocation3], 1 }
 0x129   :  { %288 = vsyncpa [#allocation5], 1 }

</bundles_post_ra>
